<compile_context>
chip_gen: v7x
topology: tpu7x:2x2x1
jax: 0.10.0
libtpu: 0.0.40
codegen_flags: <defaults>
</compile_context>

<pallas_src>
import functools
import math

import jax
import jax.numpy as jnp
from jax.experimental import pallas as pl
from jax.experimental.pallas import tpu as pltpu

LRELU_SLOPE = 0.1
_SQRT_HALF = math.sqrt(0.5)


def _round_up(x, m):
    return ((x + m - 1) // m) * m


@functools.lru_cache(maxsize=None)
def _vmem_budget():
    """(tile-sizing budget, compiler vmem limit) per TPU generation."""
    try:
        kind = jax.devices()[0].device_kind.lower()
    except Exception:   # pragma: no cover
        kind = ""
    if ("v2" in kind) or ("v3" in kind):
        return 10 * 1024 * 1024, 14 * 1024 * 1024
    if any(t in kind for t in ("v5 lite", "v5e", "v5litepod", "v6")):
        # v5e / v6e: 128 MiB physical VMEM -> large time tiles.
        return 90 * 1024 * 1024, 100 * 1024 * 1024
    # v7x (64 MiB VMEM) and unknown chips: stay conservative.
    return 38 * 1024 * 1024, 50 * 1024 * 1024


# ----------------------------------------------------------------------------
# Generic grouped Conv1d kernel (stride already folded into channels).
#   x_ref : (1, g_blk, CinR_p, Lt)              bf16   body of the time tile
#   h_ref : (1, g_blk, CinR_p, HALO)            bf16   right halo (first Kq-1 cols used)
#   w_ref : fused   (g_blk, Cout_p, Kq*CinR_p)  bf16
#           unfused (g_blk, Kq, Cout_p, CinR_p) bf16
#   b_ref : (g_blk, Cout_p, 1)                  f32
#   o_ref : (1, g_blk, Cout_p, Lt)              f32
# ----------------------------------------------------------------------------
def _conv_kernel(x_ref, h_ref, w_ref, b_ref, o_ref, *, kq, g_blk, lt, fuse, leaky):
    for g in range(g_blk):                       # small (<= 8); one fused dot per group
        xc = jnp.concatenate([x_ref[0, g], h_ref[0, g]], axis=-1)   # (CinR_p, Lt+HALO)
        if fuse:
            # Shifted-view stack built once in VMEM -> single MXU dot with a
            # deep contraction (Kq*CinR_p) instead of Kq shallow matmuls.
            stk = jnp.concatenate([xc[:, q:q + lt] for q in range(kq)], axis=0)
            acc = jnp.dot(w_ref[g], stk, preferred_element_type=jnp.float32)
        else:
            # Contraction is already >= 256; a short per-tap chain is cheaper
            # than materializing a multi-MiB stack.
            acc = jnp.dot(w_ref[g, 0], xc[:, 0:lt], preferred_element_type=jnp.float32)
            for q in range(1, kq):
                acc = acc + jnp.dot(w_ref[g, q], xc[:, q:q + lt],
                                    preferred_element_type=jnp.float32)
        out = acc + b_ref[g]                     # f32 epilogue (safe on v5e VPU)
        if leaky:
            out = jnp.where(out >= 0.0, out, LRELU_SLOPE * out)
        o_ref[0, g] = out.astype(o_ref.dtype)


def conv1d_pallas(x, w, b=None, *, stride=1, padding=0, groups=1, leaky=False,
                  time_tile_cap=4096):
    """PyTorch-semantics Conv1d. x:(B,Cin,L) f32, w:(Cout,Cin//groups,K), b:(Cout,)."""
    B, Cin, L = x.shape
    Cout, Cin_g, K = w.shape
    G, s = groups, stride
    Cout_g = Cout // G
    assert Cin_g * G == Cin and Cout_g * G == Cout
    if b is None:
        b = jnp.zeros((Cout,), jnp.float32)

    L_out = (L + 2 * padding - K) // s + 1
    assert L_out >= 1, "conv output length must be positive"

    Kq = -(-K // s)                      # taps after folding stride into channels
    CinR = Cin_g * s                     # channels after polyphase fold
    CinR_p = _round_up(CinR, 16)         # 16: native bf16 sublane tile (aligned concat)
    Cout_p = _round_up(Cout_g, 16)
    KC = Kq * CinR_p
    fuse = CinR_p < 256                  # fuse taps only when the contraction is shallow

    halo = max(128, _round_up(Kq - 1, 128))    # halo block width (lane granularity)

    # groups per grid step (amortize per-step overhead; weights stay resident)
    g_blk = max(1, min(G, 128 // Cout_p))
    while G % g_blk:
        g_blk -= 1

    budget, vmem_limit = _vmem_budget()

    def _vmem_bytes(lt):
        per_g = CinR_p * (lt + halo) * 2 + Cout_p * lt * 4           # xc + f32 acc
        per_g += (KC * lt * 2) if fuse else (2 * CinR_p * lt * 2)    # stack / tap slices
        return (2 * g_blk * CinR_p * (lt + halo) * 2   # body + halo, double buffered
                + 2 * g_blk * Cout_p * KC * 2          # weights (counted double buffered)
                + 2 * g_blk * Cout_p * 128 * 4         # bias (lane padded)
                + 2 * g_blk * Cout_p * lt * 4          # f32 output, double buffered
                + g_blk * per_g)                       # in-kernel temporaries

    Lt = min(_round_up(L_out, halo), _round_up(time_tile_cap, halo))
    while Lt > halo and _vmem_bytes(Lt) > budget:
        Lt -= halo
    nT = -(-L_out // Lt)
    lt_blocks = Lt // halo

    # ---- input prep: bf16 FIRST, zero pad, polyphase fold (no halo materialization) ----
    Lf = L_out + Kq - 1                  # folded length actually needed
    Lfold = Lf * s
    xb = x.astype(jnp.bfloat16)
    x_pad = jnp.pad(xb, ((0, 0), (0, 0),
                         (padding, max(0, Lfold - L - padding))))[:, :, :Lfold]
    x_ph = x_pad.reshape(B, G, Cin_g, Lf, s).transpose(0, 1, 2, 4, 3)
    x_ph = x_ph.reshape(B, G, CinR, Lf)
    Lph = nT * Lt + halo                 # body tiles + one halo block, all in-bounds
    x_ph = jnp.pad(x_ph, ((0, 0), (0, 0), (0, CinR_p - CinR), (0, Lph - Lf)))

    # ---- weight prep: phase fold; fused layout packs taps into the contraction ----
    wf = jnp.pad(w.astype(jnp.float32).reshape(G, Cout_g, Cin_g, K),
                 ((0, 0), (0, 0), (0, 0), (0, Kq * s - K)))
    wf = wf.reshape(G, Cout_g, Cin_g, Kq, s)     # [g,co,ci,q,r] = W[g,co,ci,q*s+r]
    if fuse:
        wf = wf.transpose(0, 1, 3, 2, 4).reshape(G, Cout_g, Kq, CinR)
        wf = jnp.pad(wf, ((0, 0), (0, Cout_p - Cout_g), (0, 0), (0, CinR_p - CinR)))
        wk = wf.reshape(G, Cout_p, KC).astype(jnp.bfloat16)
        w_spec = pl.BlockSpec((g_blk, Cout_p, KC), lambda bi, gi, ti: (gi, 0, 0))
    else:
        wf = wf.transpose(0, 3, 1, 2, 4).reshape(G, Kq, Cout_g, CinR)
        wf = jnp.pad(wf, ((0, 0), (0, 0), (0, Cout_p - Cout_g), (0, CinR_p - CinR)))
        wk = wf.astype(jnp.bfloat16)             # (G, Kq, Cout_p, CinR_p)
        w_spec = pl.BlockSpec((g_blk, Kq, Cout_p, CinR_p),
                              lambda bi, gi, ti: (gi, 0, 0, 0))

    bk = jnp.pad(b.astype(jnp.float32).reshape(G, Cout_g),
                 ((0, 0), (0, Cout_p - Cout_g))).reshape(G, Cout_p, 1)

    kernel = functools.partial(_conv_kernel, kq=Kq, g_blk=g_blk, lt=Lt,
                               fuse=fuse, leaky=bool(leaky))
    out = pl.pallas_call(
        kernel,
        out_shape=jax.ShapeDtypeStruct((B, G, Cout_p, nT * Lt), jnp.float32),
        grid_spec=pltpu.PrefetchScalarGridSpec(
            num_scalar_prefetch=0,
            grid=(B, G // g_blk, nT),
            in_specs=[
                # body tile (lane-dense, pipelined)
                pl.BlockSpec((1, g_blk, CinR_p, Lt),
                             lambda bi, gi, ti: (bi, gi, 0, ti)),
                # right halo: same array, 128-wide block starting at the next tile
                pl.BlockSpec((1, g_blk, CinR_p, halo),
                             lambda bi, gi, ti: (bi, gi, 0, (ti + 1) * lt_blocks)),
                w_spec,
                pl.BlockSpec((g_blk, Cout_p, 1), lambda bi, gi, ti: (gi, 0, 0)),
            ],
            out_specs=pl.BlockSpec((1, g_blk, Cout_p, Lt),
                                   lambda bi, gi, ti: (bi, gi, 0, ti)),
        ),
        compiler_params=pltpu.CompilerParams(
            dimension_semantics=("parallel", "parallel", "parallel"),
            vmem_limit_bytes=vmem_limit),
    )(x_ph, x_ph, wk, bk)

    if Cout_p != Cout_g:                                   # only conv_post (Cout_g=1)
        out = out[:, :, :Cout_g, :]
    out = out.reshape(B, Cout, nT * Lt)                    # free reshape: (G, Cout_g)->Cout
    return out[:, :, :L_out]


# ----------------------------------------------------------------------------
# DWT_1D ('haar': rec_lo=[√.5,√.5], rec_hi=[√.5,-√.5], pad=0, stride=2) -> VPU-trivial
# ----------------------------------------------------------------------------
def dwt1d_haar(x):
    L2 = (x.shape[-1] // 2) * 2
    xe, xo = x[..., 0:L2:2], x[..., 1:L2:2]
    return _SQRT_HALF * (xe + xo), _SQRT_HALF * (xe - xo)


# ----------------------------------------------------------------------------
# DiscriminatorS
# ----------------------------------------------------------------------------
_DISC_CONV_SPECS = [
    # (cout, cin, k, stride, pad, groups)
    (128, 1, 15, 1, 7, 1),
    (128, 128, 41, 2, 20, 4),
    (256, 128, 41, 2, 20, 16),
    (512, 256, 41, 4, 20, 16),
    (1024, 512, 41, 4, 20, 16),
    (1024, 1024, 41, 1, 20, 16),
    (1024, 1024, 5, 1, 2, 1),
]


def _init_conv(key, cout, cin_g, k, scale=0.02):
    kw, kb = jax.random.split(key)
    w = scale * jax.random.normal(kw, (cout, cin_g, k), jnp.float32)
    b = scale * jax.random.normal(kb, (cout,), jnp.float32)
    return w, b


def init_discriminator_s(key):
    keys = jax.random.split(key, len(_DISC_CONV_SPECS) + 3)
    return {
        'dwt_conv1': _init_conv(keys[0], 128, 2, 15),
        'dwt_conv2': _init_conv(keys[1], 128, 4, 41),
        'convs': [_init_conv(keys[2 + i], cout, cin // groups, k)
                  for i, (cout, cin, k, _, _, groups)
                  in enumerate(_DISC_CONV_SPECS)],
        'conv_post': _init_conv(keys[-1], 1, 1024, 3),
    }


def discriminator_s_forward(p, x):
    fmap = []
    d1_lo, d1_hi = dwt1d_haar(x)                 # DWT_1D returns (low, high)
    w, b = p['dwt_conv1']
    x_d1 = conv1d_pallas(jnp.concatenate([d1_lo, d1_hi], axis=1), w, b,
                         stride=1, padding=7)
    d2_ll, d2_lh = dwt1d_haar(d1_lo)
    d2_hl, d2_hh = dwt1d_haar(d1_hi)
    w, b = p['dwt_conv2']
    x_d2 = conv1d_pallas(jnp.concatenate([d2_ll, d2_lh, d2_hl, d2_hh], axis=1),
                         w, b, stride=2, padding=20)
    for i, ((w, b), (_co, _ci, _k, stride, pad, groups)) in enumerate(
            zip(p['convs'], _DISC_CONV_SPECS)):
        x = conv1d_pallas(x, w, b, stride=stride, padding=pad, groups=groups,
                          leaky=True)            # conv + leaky_relu fused
        fmap.append(x)
        if i == 0:
            x = jnp.concatenate([x, x_d1], axis=2)   # cat along time (dim=2)
        if i == 1:
            x = jnp.concatenate([x, x_d2], axis=2)
    w, b = p['conv_post']
    x = conv1d_pallas(x, w, b, stride=1, padding=1)
    fmap.append(x)
    return x.reshape(x.shape[0], -1), fmap


# ----------------------------------------------------------------------------
# Reference conv (XLA) for self-checks of the Pallas kernel.
# ----------------------------------------------------------------------------
def _conv_ref(x, w, b, stride, padding, groups):
    out = jax.lax.conv_general_dilated(
        x, w, window_strides=(stride,), padding=[(padding, padding)],
        dimension_numbers=("NCH", "OIH", "NCH"), feature_group_count=groups)
    return out + b[None, :, None]


if __name__ == "__main__":
    key = jax.random.PRNGKey(0)
    k_par, k_x, k1, k2, k3, k4, k5, k6 = jax.random.split(key, 8)

    # self-check 1: grouped + strided + padded conv -> fused-tap kernel path
    cx = jax.random.normal(k1, (2, 8, 75), jnp.float32)
    cw = jax.random.normal(k2, (8, 2, 7), jnp.float32)
    cb = jax.random.normal(k3, (8,), jnp.float32)
    got = conv1d_pallas(cx, cw, cb, stride=2, padding=3, groups=4)
    ref = _conv_ref(cx, cw, cb, 2, 3, 4)
    err = jnp.max(jnp.abs(got - ref)) / (jnp.max(jnp.abs(ref)) + 1e-6)
    assert float(err) < 2e-2, f"fused-path self-check failed: rel err {float(err)}"

    # self-check 2: wide-Cin conv -> per-tap (unfused) kernel path
    cx2 = jax.random.normal(k4, (1, 256, 40), jnp.float32)
    cw2 = 0.1 * jax.random.normal(k5, (16, 256, 3), jnp.float32)
    cb2 = jax.random.normal(k6, (16,), jnp.float32)
    got2 = conv1d_pallas(cx2, cw2, cb2, stride=1, padding=1, groups=1)
    ref2 = _conv_ref(cx2, cw2, cb2, 1, 1, 1)
    err2 = jnp.max(jnp.abs(got2 - ref2)) / (jnp.max(jnp.abs(ref2)) + 1e-6)
    assert float(err2) < 2e-2, f"unfused-path self-check failed: rel err {float(err2)}"

    params = init_discriminator_s(k_par)
    # (B=2, C=1, T=64); T divisible by 4 as required by the two DWT levels.
    x = jax.random.normal(k_x, (2, 1, 64), jnp.float32)

    fwd = jax.jit(discriminator_s_forward)
    out, fmap = fwd(params, x)
    jax.block_until_ready((out, fmap))
    print("KERNEL_OK")
</pallas_src>

<mosaic_0001>
module attributes {stable_mosaic.version = 11 : i64} {
  func.func @_conv_kernel(%arg0: i32, %arg1: i32, %arg2: i32, %arg3: memref<1x4x16x128xbf16, #tpu.memory_space<vmem>>, %arg4: memref<1x4x16x128xbf16, #tpu.memory_space<vmem>>, %arg5: memref<4x16x64xbf16, #tpu.memory_space<vmem>>, %arg6: memref<4x16x1xf32, #tpu.memory_space<vmem>>, %arg7: memref<1x4x16x128xf32, #tpu.memory_space<vmem>>) attributes {dimension_semantics = [#tpu.dimension_semantics<parallel>, #tpu.dimension_semantics<parallel>, #tpu.dimension_semantics<parallel>], iteration_bounds = array<i64: 2, 1, 1>, scalar_prefetch = 0 : i64, scratch_operands = 0 : i64, tpu.core_type = #tpu.core_type<tc>, window_params = [{transform_indices = @transform_0, window_bounds = array<i64: 1, 4, 16, 128>}, {transform_indices = @transform_1, window_bounds = array<i64: 1, 4, 16, 128>}, {transform_indices = @transform_2, window_bounds = array<i64: 4, 16, 64>}, {transform_indices = @transform_3, window_bounds = array<i64: 4, 16, 1>}, {transform_indices = @transform_4, window_bounds = array<i64: 1, 4, 16, 128>}]} {
    %c0 = arith.constant 0 : index
    %c0_0 = arith.constant 0 : index
    %c0_1 = arith.constant 0 : index
    %c0_2 = arith.constant 0 : index
    %0 = vector.load %arg3[%c0, %c0_0, %c0_1, %c0_2] : memref<1x4x16x128xbf16, #tpu.memory_space<vmem>>, vector<1x1x16x128xbf16>
    %1 = vector.shape_cast %0 : vector<1x1x16x128xbf16> to vector<16x128xbf16>
    %c0_3 = arith.constant 0 : index
    %c0_4 = arith.constant 0 : index
    %c0_5 = arith.constant 0 : index
    %c0_6 = arith.constant 0 : index
    %2 = vector.load %arg4[%c0_3, %c0_4, %c0_5, %c0_6] : memref<1x4x16x128xbf16, #tpu.memory_space<vmem>>, vector<1x1x16x128xbf16>
    %3 = vector.shape_cast %2 : vector<1x1x16x128xbf16> to vector<16x128xbf16>
    %4 = tpu.concatenate %1, %3 in 1 : vector<16x128xbf16>, vector<16x128xbf16> -> vector<16x256xbf16>
    %5 = vector.extract_strided_slice %4 {offsets = [0, 0], sizes = [16, 128], strides = [1, 1]} : vector<16x256xbf16> to vector<16x128xbf16>
    %6 = vector.extract_strided_slice %4 {offsets = [0, 1], sizes = [16, 128], strides = [1, 1]} : vector<16x256xbf16> to vector<16x128xbf16>
    %7 = vector.extract_strided_slice %4 {offsets = [0, 2], sizes = [16, 128], strides = [1, 1]} : vector<16x256xbf16> to vector<16x128xbf16>
    %8 = vector.extract_strided_slice %4 {offsets = [0, 3], sizes = [16, 128], strides = [1, 1]} : vector<16x256xbf16> to vector<16x128xbf16>
    %9 = tpu.concatenate %5, %6, %7, %8 in 0 : vector<16x128xbf16>, vector<16x128xbf16>, vector<16x128xbf16>, vector<16x128xbf16> -> vector<64x128xbf16>
    %c0_7 = arith.constant 0 : index
    %c0_8 = arith.constant 0 : index
    %c0_9 = arith.constant 0 : index
    %10 = vector.load %arg5[%c0_7, %c0_8, %c0_9] : memref<4x16x64xbf16, #tpu.memory_space<vmem>>, vector<1x16x64xbf16>
    %11 = vector.shape_cast %10 : vector<1x16x64xbf16> to vector<16x64xbf16>
    %cst = arith.constant dense<0.000000e+00> : vector<16x128xf32>
    %12 = tpu.matmul %11, %9, %cst {dimension_numbers = #tpu.dot_dimension_numbers<[1], [0], [0], [1], [0, 0, 1, 1], [], []>} : vector<16x64xbf16>, vector<64x128xbf16>, vector<16x128xf32> -> vector<16x128xf32>
    %c0_10 = arith.constant 0 : index
    %c0_11 = arith.constant 0 : index
    %c0_12 = arith.constant 0 : index
    %13 = vector.load %arg6[%c0_10, %c0_11, %c0_12] : memref<4x16x1xf32, #tpu.memory_space<vmem>>, vector<1x16x1xf32>
    %14 = vector.shape_cast %13 : vector<1x16x1xf32> to vector<16x1xf32>
    %15 = vector.broadcast %14 : vector<16x1xf32> to vector<16x128xf32>
    %16 = arith.addf %12, %15 : vector<16x128xf32>
    %c0_13 = arith.constant 0 : index
    %c0_14 = arith.constant 0 : index
    %c0_15 = arith.constant 0 : index
    %c0_16 = arith.constant 0 : index
    %17 = vector.load %arg7[%c0_13, %c0_14, %c0_15, %c0_16] : memref<1x4x16x128xf32, #tpu.memory_space<vmem>>, vector<1x1x16x128xf32>
    %18 = vector.shape_cast %17 : vector<1x1x16x128xf32> to vector<16x128xf32>
    %19 = vector.shape_cast %16 : vector<16x128xf32> to vector<1x1x16x128xf32>
    tpu.vector_store %arg7[%c0_13, %c0_14, %c0_15, %c0_16], %19 {strides = array<i32>} : memref<1x4x16x128xf32, #tpu.memory_space<vmem>>, vector<1x1x16x128xf32>,
    %c0_17 = arith.constant 0 : index
    %c1 = arith.constant 1 : index
    %c0_18 = arith.constant 0 : index
    %c0_19 = arith.constant 0 : index
    %20 = vector.load %arg3[%c0_17, %c1, %c0_18, %c0_19] : memref<1x4x16x128xbf16, #tpu.memory_space<vmem>>, vector<1x1x16x128xbf16>
    %21 = vector.shape_cast %20 : vector<1x1x16x128xbf16> to vector<16x128xbf16>
    %c0_20 = arith.constant 0 : index
    %c1_21 = arith.constant 1 : index
    %c0_22 = arith.constant 0 : index
    %c0_23 = arith.constant 0 : index
    %22 = vector.load %arg4[%c0_20, %c1_21, %c0_22, %c0_23] : memref<1x4x16x128xbf16, #tpu.memory_space<vmem>>, vector<1x1x16x128xbf16>
    %23 = vector.shape_cast %22 : vector<1x1x16x128xbf16> to vector<16x128xbf16>
    %24 = tpu.concatenate %21, %23 in 1 : vector<16x128xbf16>, vector<16x128xbf16> -> vector<16x256xbf16>
    %25 = vector.extract_strided_slice %24 {offsets = [0, 0], sizes = [16, 128], strides = [1, 1]} : vector<16x256xbf16> to vector<16x128xbf16>
    %26 = vector.extract_strided_slice %24 {offsets = [0, 1], sizes = [16, 128], strides = [1, 1]} : vector<16x256xbf16> to vector<16x128xbf16>
    %27 = vector.extract_strided_slice %24 {offsets = [0, 2], sizes = [16, 128], strides = [1, 1]} : vector<16x256xbf16> to vector<16x128xbf16>
    %28 = vector.extract_strided_slice %24 {offsets = [0, 3], sizes = [16, 128], strides = [1, 1]} : vector<16x256xbf16> to vector<16x128xbf16>
    %29 = tpu.concatenate %25, %26, %27, %28 in 0 : vector<16x128xbf16>, vector<16x128xbf16>, vector<16x128xbf16>, vector<16x128xbf16> -> vector<64x128xbf16>
    %c1_24 = arith.constant 1 : index
    %c0_25 = arith.constant 0 : index
    %c0_26 = arith.constant 0 : index
    %30 = vector.load %arg5[%c1_24, %c0_25, %c0_26] : memref<4x16x64xbf16, #tpu.memory_space<vmem>>, vector<1x16x64xbf16>
    %31 = vector.shape_cast %30 : vector<1x16x64xbf16> to vector<16x64xbf16>
    %cst_27 = arith.constant dense<0.000000e+00> : vector<16x128xf32>
    %32 = tpu.matmul %31, %29, %cst_27 {dimension_numbers = #tpu.dot_dimension_numbers<[1], [0], [0], [1], [0, 0, 1, 1], [], []>} : vector<16x64xbf16>, vector<64x128xbf16>, vector<16x128xf32> -> vector<16x128xf32>
    %c1_28 = arith.constant 1 : index
    %c0_29 = arith.constant 0 : index
    %c0_30 = arith.constant 0 : index
    %33 = vector.load %arg6[%c1_28, %c0_29, %c0_30] : memref<4x16x1xf32, #tpu.memory_space<vmem>>, vector<1x16x1xf32>
    %34 = vector.shape_cast %33 : vector<1x16x1xf32> to vector<16x1xf32>
    %35 = vector.broadcast %34 : vector<16x1xf32> to vector<16x128xf32>
    %36 = arith.addf %32, %35 : vector<16x128xf32>
    %c0_31 = arith.constant 0 : index
    %c1_32 = arith.constant 1 : index
    %c0_33 = arith.constant 0 : index
    %c0_34 = arith.constant 0 : index
    %37 = vector.load %arg7[%c0_31, %c1_32, %c0_33, %c0_34] : memref<1x4x16x128xf32, #tpu.memory_space<vmem>>, vector<1x1x16x128xf32>
    %38 = vector.shape_cast %37 : vector<1x1x16x128xf32> to vector<16x128xf32>
    %39 = vector.shape_cast %36 : vector<16x128xf32> to vector<1x1x16x128xf32>
    tpu.vector_store %arg7[%c0_31, %c1_32, %c0_33, %c0_34], %39 {strides = array<i32>} : memref<1x4x16x128xf32, #tpu.memory_space<vmem>>, vector<1x1x16x128xf32>,
    %c0_35 = arith.constant 0 : index
    %c2 = arith.constant 2 : index
    %c0_36 = arith.constant 0 : index
    %c0_37 = arith.constant 0 : index
    %40 = vector.load %arg3[%c0_35, %c2, %c0_36, %c0_37] : memref<1x4x16x128xbf16, #tpu.memory_space<vmem>>, vector<1x1x16x128xbf16>
    %41 = vector.shape_cast %40 : vector<1x1x16x128xbf16> to vector<16x128xbf16>
    %c0_38 = arith.constant 0 : index
    %c2_39 = arith.constant 2 : index
    %c0_40 = arith.constant 0 : index
    %c0_41 = arith.constant 0 : index
    %42 = vector.load %arg4[%c0_38, %c2_39, %c0_40, %c0_41] : memref<1x4x16x128xbf16, #tpu.memory_space<vmem>>, vector<1x1x16x128xbf16>
    %43 = vector.shape_cast %42 : vector<1x1x16x128xbf16> to vector<16x128xbf16>
    %44 = tpu.concatenate %41, %43 in 1 : vector<16x128xbf16>, vector<16x128xbf16> -> vector<16x256xbf16>
    %45 = vector.extract_strided_slice %44 {offsets = [0, 0], sizes = [16, 128], strides = [1, 1]} : vector<16x256xbf16> to vector<16x128xbf16>
    %46 = vector.extract_strided_slice %44 {offsets = [0, 1], sizes = [16, 128], strides = [1, 1]} : vector<16x256xbf16> to vector<16x128xbf16>
    %47 = vector.extract_strided_slice %44 {offsets = [0, 2], sizes = [16, 128], strides = [1, 1]} : vector<16x256xbf16> to vector<16x128xbf16>
    %48 = vector.extract_strided_slice %44 {offsets = [0, 3], sizes = [16, 128], strides = [1, 1]} : vector<16x256xbf16> to vector<16x128xbf16>
    %49 = tpu.concatenate %45, %46, %47, %48 in 0 : vector<16x128xbf16>, vector<16x128xbf16>, vector<16x128xbf16>, vector<16x128xbf16> -> vector<64x128xbf16>
    %c2_42 = arith.constant 2 : index
    %c0_43 = arith.constant 0 : index
    %c0_44 = arith.constant 0 : index
    %50 = vector.load %arg5[%c2_42, %c0_43, %c0_44] : memref<4x16x64xbf16, #tpu.memory_space<vmem>>, vector<1x16x64xbf16>
    %51 = vector.shape_cast %50 : vector<1x16x64xbf16> to vector<16x64xbf16>
    %cst_45 = arith.constant dense<0.000000e+00> : vector<16x128xf32>
    %52 = tpu.matmul %51, %49, %cst_45 {dimension_numbers = #tpu.dot_dimension_numbers<[1], [0], [0], [1], [0, 0, 1, 1], [], []>} : vector<16x64xbf16>, vector<64x128xbf16>, vector<16x128xf32> -> vector<16x128xf32>
    %c2_46 = arith.constant 2 : index
    %c0_47 = arith.constant 0 : index
    %c0_48 = arith.constant 0 : index
    %53 = vector.load %arg6[%c2_46, %c0_47, %c0_48] : memref<4x16x1xf32, #tpu.memory_space<vmem>>, vector<1x16x1xf32>
    %54 = vector.shape_cast %53 : vector<1x16x1xf32> to vector<16x1xf32>
    %55 = vector.broadcast %54 : vector<16x1xf32> to vector<16x128xf32>
    %56 = arith.addf %52, %55 : vector<16x128xf32>
    %c0_49 = arith.constant 0 : index
    %c2_50 = arith.constant 2 : index
    %c0_51 = arith.constant 0 : index
    %c0_52 = arith.constant 0 : index
    %57 = vector.load %arg7[%c0_49, %c2_50, %c0_51, %c0_52] : memref<1x4x16x128xf32, #tpu.memory_space<vmem>>, vector<1x1x16x128xf32>
    %58 = vector.shape_cast %57 : vector<1x1x16x128xf32> to vector<16x128xf32>
    %59 = vector.shape_cast %56 : vector<16x128xf32> to vector<1x1x16x128xf32>
    tpu.vector_store %arg7[%c0_49, %c2_50, %c0_51, %c0_52], %59 {strides = array<i32>} : memref<1x4x16x128xf32, #tpu.memory_space<vmem>>, vector<1x1x16x128xf32>,
    %c0_53 = arith.constant 0 : index
    %c3 = arith.constant 3 : index
    %c0_54 = arith.constant 0 : index
    %c0_55 = arith.constant 0 : index
    %60 = vector.load %arg3[%c0_53, %c3, %c0_54, %c0_55] : memref<1x4x16x128xbf16, #tpu.memory_space<vmem>>, vector<1x1x16x128xbf16>
    %61 = vector.shape_cast %60 : vector<1x1x16x128xbf16> to vector<16x128xbf16>
    %c0_56 = arith.constant 0 : index
    %c3_57 = arith.constant 3 : index
    %c0_58 = arith.constant 0 : index
    %c0_59 = arith.constant 0 : index
    %62 = vector.load %arg4[%c0_56, %c3_57, %c0_58, %c0_59] : memref<1x4x16x128xbf16, #tpu.memory_space<vmem>>, vector<1x1x16x128xbf16>
    %63 = vector.shape_cast %62 : vector<1x1x16x128xbf16> to vector<16x128xbf16>
    %64 = tpu.concatenate %61, %63 in 1 : vector<16x128xbf16>, vector<16x128xbf16> -> vector<16x256xbf16>
    %65 = vector.extract_strided_slice %64 {offsets = [0, 0], sizes = [16, 128], strides = [1, 1]} : vector<16x256xbf16> to vector<16x128xbf16>
    %66 = vector.extract_strided_slice %64 {offsets = [0, 1], sizes = [16, 128], strides = [1, 1]} : vector<16x256xbf16> to vector<16x128xbf16>
    %67 = vector.extract_strided_slice %64 {offsets = [0, 2], sizes = [16, 128], strides = [1, 1]} : vector<16x256xbf16> to vector<16x128xbf16>
    %68 = vector.extract_strided_slice %64 {offsets = [0, 3], sizes = [16, 128], strides = [1, 1]} : vector<16x256xbf16> to vector<16x128xbf16>
    %69 = tpu.concatenate %65, %66, %67, %68 in 0 : vector<16x128xbf16>, vector<16x128xbf16>, vector<16x128xbf16>, vector<16x128xbf16> -> vector<64x128xbf16>
    %c3_60 = arith.constant 3 : index
    %c0_61 = arith.constant 0 : index
    %c0_62 = arith.constant 0 : index
    %70 = vector.load %arg5[%c3_60, %c0_61, %c0_62] : memref<4x16x64xbf16, #tpu.memory_space<vmem>>, vector<1x16x64xbf16>
    %71 = vector.shape_cast %70 : vector<1x16x64xbf16> to vector<16x64xbf16>
    %cst_63 = arith.constant dense<0.000000e+00> : vector<16x128xf32>
    %72 = tpu.matmul %71, %69, %cst_63 {dimension_numbers = #tpu.dot_dimension_numbers<[1], [0], [0], [1], [0, 0, 1, 1], [], []>} : vector<16x64xbf16>, vector<64x128xbf16>, vector<16x128xf32> -> vector<16x128xf32>
    %c3_64 = arith.constant 3 : index
    %c0_65 = arith.constant 0 : index
    %c0_66 = arith.constant 0 : index
    %73 = vector.load %arg6[%c3_64, %c0_65, %c0_66] : memref<4x16x1xf32, #tpu.memory_space<vmem>>, vector<1x16x1xf32>
    %74 = vector.shape_cast %73 : vector<1x16x1xf32> to vector<16x1xf32>
    %75 = vector.broadcast %74 : vector<16x1xf32> to vector<16x128xf32>
    %76 = arith.addf %72, %75 : vector<16x128xf32>
    %c0_67 = arith.constant 0 : index
    %c3_68 = arith.constant 3 : index
    %c0_69 = arith.constant 0 : index
    %c0_70 = arith.constant 0 : index
    %77 = vector.load %arg7[%c0_67, %c3_68, %c0_69, %c0_70] : memref<1x4x16x128xf32, #tpu.memory_space<vmem>>, vector<1x1x16x128xf32>
    %78 = vector.shape_cast %77 : vector<1x1x16x128xf32> to vector<16x128xf32>
    %79 = vector.shape_cast %76 : vector<16x128xf32> to vector<1x1x16x128xf32>
    tpu.vector_store %arg7[%c0_67, %c3_68, %c0_69, %c0_70], %79 {strides = array<i32>} : memref<1x4x16x128xf32, #tpu.memory_space<vmem>>, vector<1x1x16x128xf32>,
    return
  }
  func.func @transform_0(%arg0: i32, %arg1: i32, %arg2: i32) -> (i32, i32, i32, i32) {
    %c0_i32 = arith.constant 0 : i32
    %c0_i32_0 = arith.constant 0 : i32
    return %arg0, %arg1, %c0_i32, %arg2 : i32, i32, i32, i32
  }
  func.func @transform_1(%arg0: i32, %arg1: i32, %arg2: i32) -> (i32, i32, i32, i32) {
    %c1_i32 = arith.constant 1 : i32
    %0 = arith.addi %arg2, %c1_i32 : i32
    %c1_i32_0 = arith.constant 1 : i32
    %1 = arith.muli %0, %c1_i32_0 : i32
    %c0_i32 = arith.constant 0 : i32
    %c0_i32_1 = arith.constant 0 : i32
    return %arg0, %arg1, %c0_i32, %1 : i32, i32, i32, i32
  }
  func.func @transform_2(%arg0: i32, %arg1: i32, %arg2: i32) -> (i32, i32, i32) {
    %c0_i32 = arith.constant 0 : i32
    %c0_i32_0 = arith.constant 0 : i32
    %c0_i32_1 = arith.constant 0 : i32
    return %arg1, %c0_i32, %c0_i32_0 : i32, i32, i32
  }
  func.func @transform_3(%arg0: i32, %arg1: i32, %arg2: i32) -> (i32, i32, i32) {
    %c0_i32 = arith.constant 0 : i32
    %c0_i32_0 = arith.constant 0 : i32
    %c0_i32_1 = arith.constant 0 : i32
    return %arg1, %c0_i32, %c0_i32_0 : i32, i32, i32
  }
  func.func @transform_4(%arg0: i32, %arg1: i32, %arg2: i32) -> (i32, i32, i32, i32) {
    %c0_i32 = arith.constant 0 : i32
    %c0_i32_0 = arith.constant 0 : i32
    return %arg0, %arg1, %c0_i32, %arg2 : i32, i32, i32, i32
  }
}

</mosaic_0001>

<bundles_post_ra>
// kernel: tpu_custom_call.1
= control target key start
LH: loop header
LB: loop body
LE: loop exit
PB: predicated region body
PF: predicated region fallthrough
CT: control target
= control target key end

     0   :  { %s1703_s0 = inlined_call_operand.hbm [shape: bf16[2,4,16,256], index: 0, kind: input, shape index: {}]   ;;  %s1704_s1 = inlined_call_operand.hbm [shape: bf16[2,4,16,256], index: 1, kind: input, shape index: {}]   ;;  %s1705_s2 = inlined_call_operand.vmem [shape: bf16[4,16,64], index: 2, kind: input, shape index: {}]   ;;  %s1706_s3 = inlined_call_operand.vmem [shape: f32[4,16,1], index: 3, kind: input, shape index: {}]   ;;  %s1707_s4 = inlined_call_operand.hbm [shape: f32[2,4,16,128], index: 4, kind: output, shape index: {}]  }
   0x1   :  { %1712 = sst [smem:[#allocation12_spill]] %s1703_s0 }
   0x2   :  { %9 = vsyncpa [#allocation3], 0 }
   0x3   :  { %11 = vsyncpa [#allocation3 + $0x1], 0 }
   0x4   :  { %12 = vsyncpa [#allocation6], 0 }
   0x5   :  { %14 = vsyncpa [#allocation6 + $0x1], 0 }
   0x6   :  { %15 = vsyncpa [#allocation4], 0 }
   0x7   :  { %17 = vsyncpa [#allocation4 + $0x1], 0  ;;  %s1350_s15 = smov 0   ;;  %s1352_s16 = smov 0  }
   0x8   :  { %s1354_s17 = smov 0   ;;  %s1356_s18 = smov 0  }
   0x9   :  { %s1358_s19 = smov 0   ;;  %s1360_s20 = smov 0  }
   0xa LB: > { %s932_s21 = sadd.s32 4294967295, %s1309_s20   ;;  %s933_s22 = sadd.s32 4294967294, %s1309_s20   ;;  %s1309_s20 = sphi %s1360_s20, %s23_s20   ;;  %s1305_s19 = sphi %s1358_s19, %s1731_s19   ;;  %s1301_s18 = sphi %s1356_s18, %s1730_s18   ;;  %s1297_s17 = sphi %s1354_s17, %s1729_s17   ;;  %s1293_s16 = sphi %s1352_s16, %s1728_s16   ;;  %s1289_s15 = sphi %s1350_s15, %s1727_s15  }
   0xb   : > { %s42_s23 = sadd.s32 1, %s1305_s19  ;;  %s53_s24 = sadd.s32 1, %s1297_s17 }
   0xc   : > { %p44_p0 = scmp.ge.s32.totalorder %s42_s23, 2  ;;  %p60_p1 = scmp.ne.s32.totalorder %s1297_s17, %s1293_s16 }
   0xd   : > { %p61_p2 = scmp.eq.s32.totalorder %s1309_s20, 0  ;;  %p66_p3 = scmp.ne.s32.totalorder %s1293_s16, %s1289_s15 }
   0xe   : > { %s1733_s23 = smov (%p44_p0, %s42_s23), 0  ;;  %p67_p5 = scmp.eq.s32.totalorder %s932_s21, 0 }
   0xf   : > { %1713 = sst [smem:[#allocation11_spill]] %s1733_s23  ;;  %p1391_p4 = por %p61_p2, %p60_p1 }
  0x10   : > { %s46_s26 = ssub.s32 %s1305_s19, %s1733_s23  ;;  %p178_p6 = scmp.eq.s32.totalorder %s932_s21, 1 }
  0x11   : > { %p51_p7 = scmp.eq.s32.totalorder %s46_s26, 0  ;;  %p1397_p8 = por %p67_p5, %p66_p3 }
  0x12   : > { %p1401_p9 = por %p178_p6, %p60_p1  ;;  %p184_p10 = scmp.eq.s32.totalorder %s933_s22, 1 }
  0x13   : > { %s1715_s27 = scalar_select %p1397_p8, 1, 0 }
  0x14   : > { %s1716_s28 = scalar_select %p1401_p9, 1, 0 }
  0x15   : > { %s1406_s29 = scalar_select %p51_p7, %s1297_s17, %s53_s24  }
  0x16   : > { %p1408_p11 = por %p184_p10, %p66_p3  ;;  %p1087_p13 = scmp.lt.s32.totalorder %s1309_s20, 2 }
  0x17   : > { %s1415_s5 = sand.u32 1, %s1297_s17   ;;  %s999_s7 = sshll.u32 %s1305_s19, 10 }
  0x18   : > { %s1717_s30 = scalar_select %p1408_p11, 1, 0 }
  0x19   : > { %s938_s6 = sshll.u32 %s1415_s5, 5  ;;  %s1718_s0 = sld [smem:[#allocation12_spill]] }
  0x1a   : > { %s228_s11 = scalar_lea.vmem [#allocation2], %s938_s6  ;;  %p1432_p0 = pnand %p1087_p13, %p1391_p4 }
  0x1b   : > { %s239_s12 = sshll.u32 %s228_s11, 4  ;;  %s225_s14 = scalar_lea.sflag [#allocation3], %s1415_s5  ;;  %s1428_s12 = int_to_ptr.vmem [resolvable:$true] %s239_s12 }
  0x1c   : > { %p1164_p2 = pneg %p1432_p0 }
  0x1f   : > { %s1424_s10 = scalar_lea.hbm %s1718_s0, %s999_s7  ;;  %s1167_s26 = scalar_lea.hbm %s1718_s0, 2048 }
  0x20   : > { %s1162_s21 = scalar_lea.hbm %s1424_s10, 512  ;;  %p1168_p4 = scmp.lt.u32.totalorder %s1424_s10, %s1718_s0 }
  0x21   : > { %p1163_p1 = scmp.ne.s32.totalorder %s1424_s10, %s1162_s21  ;;  %p1169_p6 = scmp.lt.u32.totalorder %s1167_s26, %s1162_s21 }
  0x22   : > { %p1171_p10 = scmp.lt.u32.totalorder %s1162_s21, %s1424_s10 }
  0x23   : > { %p1165_p3 = pnand %p1164_p2, %p1163_p1  ;;  %p1170_p7 = por %p1169_p6, %p1168_p4 }
  0x25   : > { %p1166_p5 = pneg %p1165_p3  ;;  %p1172_p13 = por %p1171_p10, %p1170_p7 }
  0x27   : > { %p1173_p12 = pnand %p1172_p13, %p1166_p5 }
  0x29   : > { %1176 = shalt.err (!%p1173_p12)
}
  0x2a   : > { %s1177_s9 = scalar_lea.vmem %s1428_s12, 512  ;;  %s1311_s11 = smov [#allocation2]  }
  0x2b   : > { %p1178_p1 = scmp.ne.s32.totalorder %s1428_s12, %s1177_s9  ;;  %s1182_s22 = sshll.u32 %s1311_s11, 4  ;;  %s1183_s22 = int_to_ptr.vmem [resolvable:$false] %s1182_s22 }
  0x2c   : > { %s1184_s24 = scalar_lea.vmem %s1183_s22, 1024  ;;  %p1185_p9 = scmp.lt.s32.totalorder %s1428_s12, %s1183_s22 }
  0x2d   : > { %p1180_p3 = pnand %p1178_p1, %p1164_p2  ;;  %p1186_p4 = scmp.lt.s32.totalorder %s1184_s24, %s1177_s9 }
  0x2f   : > { %p1181_p11 = pneg %p1180_p3  ;;  %p1187_p6 = por %p1186_p4, %p1185_p9 }
  0x31   : > { %p1188_p7 = pnand %p1187_p6, %p1181_p11 }
  0x33   : > { %1191 = shalt.err (!%p1188_p7)
}
  0x34   : > { %s1710_s21 = smov 128   ;;  %s1313_s26 = smov 64  }
  0x35   : > { %s1314_s25 = smov 4   ;;  %p944_p9 = scmp.ge.s32.totalorder %s1309_s20, 1 }
  0x36   : > { %1079 = dma.hbm_to_vmem [thread:$0]  (!%p1432_p0), %s1424_s10, 512, %s1428_s12, %s225_s14, %s1710_s21, %s1313_s26, %s1314_s25  }
  0x37   : > { %p273_p11 = scmp.lt.s32.totalorder %s1309_s20, 3  ;;  %s833_s22 = scalar_lea.hbm %s1704_s1, %s999_s7 }
  0x38   : > { %s1478_s24 = scalar_lea.hbm %s833_s22, 64  ;;  %s253_s0 = scalar_lea.vmem [#allocation5], %s938_s6 }
  0x39   : > { %p1469_p12 = pnand %p944_p9, %p273_p11  ;;  %s265_s23 = sshll.u32 %s253_s0, 4  ;;  %s1482_s23 = int_to_ptr.vmem [resolvable:$true] %s265_s23 }
  0x3a   : > { %s250_s10 = scalar_lea.sflag [#allocation6], %s1415_s5  ;;  %s1222_s12 = scalar_lea.hbm %s833_s22, 576 }
  0x3b   : > { %p1193_p5 = scmp.ne.s32.totalorder %s1478_s24, %s1222_s12  ;;  %s1197_s7 = scalar_lea.hbm %s1704_s1, 2048 }
  0x3c   : > { %p1198_p1 = scmp.lt.u32.totalorder %s1478_s24, %s1704_s1  ;;  %p1199_p3 = scmp.lt.u32.totalorder %s1197_s7, %s1222_s12 }
  0x3d   : > { %p1195_p10 = pnand %p1193_p5, %p1164_p2  ;;  %p1201_p6 = scmp.lt.u32.totalorder %s1222_s12, %s1478_s24 }
  0x3e   : > { %p1200_p4 = por %p1199_p3, %p1198_p1 }
  0x3f   : > { %p1196_p13 = pneg %p1195_p10 }
  0x40   : > { %p1202_p7 = por %p1201_p6, %p1200_p4 }
  0x42   : > { %p1203_p9 = pnand %p1202_p7, %p1196_p13 }
  0x44   : > { %1206 = shalt.err (!%p1203_p9)
}
  0x45   : > { %s1207_s0 = scalar_lea.vmem %s1482_s23, 512  ;;  %s1315_s6 = smov [#allocation5]  }
  0x46   : > { %p1208_p11 = scmp.ne.s32.totalorder %s1482_s23, %s1207_s0  ;;  %s1212_s22 = sshll.u32 %s1315_s6, 4  ;;  %s1213_s22 = int_to_ptr.vmem [resolvable:$false] %s1212_s22 }
  0x47   : > { %s1214_s21 = scalar_lea.vmem %s1213_s22, 1024  ;;  %p1215_p8 = scmp.lt.s32.totalorder %s1482_s23, %s1213_s22 }
  0x48   : > { %p1210_p5 = pnand %p1208_p11, %p1164_p2  ;;  %p1216_p1 = scmp.lt.s32.totalorder %s1214_s21, %s1207_s0 }
  0x4a   : > { %p1211_p10 = pneg %p1210_p5  ;;  %p1217_p3 = por %p1216_p1, %p1215_p8 }
  0x4c   : > { %p1218_p4 = pnand %p1217_p3, %p1211_p10 }
  0x4e   : > { %1221 = shalt.err (!%p1218_p4)
}
  0x4f   : > { %s1721_s12 = smov 128   ;;  %277 = sbr.rel (%p1469_p12) target bundleno = 486 (0x1e6), region = 36 }
  0x50   : > { %1082 = dma.hbm_to_vmem [thread:$0]  (!%p1432_p0), %s1478_s24, 512, %s1482_s23, %s250_s10, %s1721_s12, %s1313_s26, %s1314_s25  }
  0x51   : > { %s1515_s14 = sand.u32 (!%p1469_p12), 1, %s1293_s16   ;;  %p1722_p8 = scmp.ne.s32.totalorder (!%p1469_p12), %s1715_s27, 0 }
  0x52   : > { %s945_s9 = sshll.u32 (!%p1469_p12), %s1515_s14, 5  ;;  %s280_s7 = scalar_lea.sflag (!%p1469_p12), [#allocation3], %s1515_s14 }
  0x53   : > { %s1519_s13 = scalar_lea.vmem (!%p1469_p12), [#allocation2], %s945_s9 }
  0x56   : > { %1276 = dma.done.wait (%p1722_p8), %s280_s7, 512  }
  0x57   : > { %1278 = vsyncadd (%p1722_p8), %s280_s7, 4294966784  ;;  %s289_s23 = scalar_lea.sflag [#allocation6], %s1515_s14  ;;  %s1526_s5 = scalar_lea.vmem [#allocation5], %s945_s9 }
  0x58   : > { %1280 = dma.done.wait (%p1722_p8), %s289_s23, 512  }
  0x59   : > { %1282 = vsyncadd (%p1722_p8), %s289_s23, 4294966784  ;;  %v1316_v0 = vmov 0.0   ;;  %v1150_v1 = vld [vmem:[%s1519_s13 + $0x8] sm:$0xff]   ;;  %v1151_v2 = vld [vmem:[%s1519_s13] sm:$0xff]   ;;  %s1317_s26 = smov 127   ;;  %s1318_s27 = smov 126  }
  0x5a   : > { %1022 = vmatprep.subr.bf16.mxu0 %v1316_v0  ;;  %1034 = vmatprep.subr.bf16.mxu1 %v1316_v0  ;;  %v1152_v3 = vld [vmem:[%s1526_s5 + $0x8] sm:$0xff]   ;;  %v1153_v4 = vld [vmem:[%s1526_s5] sm:$0xff]   ;;  %vm1319_vm0 = vmmov 0   ;;  %s1320_s25 = smov 125   ;;  %v1154_v5 = vld [vmem:[%s1526_s5 + $0x10] sm:$0xff]   ;;  %v1321_v9 = vmov 0  }
  0x5b   : > { %472 = vrot.lane.b32.xlu1 %v1150_v1, %s1317_s26  ;;  %1035 = vmatpush3.bf16.msra.mxu1 %v1150_v1  ;;  %v1550_v6 = vld [vmem:[%s1519_s13 + $0x10] sm:$0xff]   ;;  %v1156_v7 = vld [vmem:[%s1526_s5 + $0x18] sm:$0xff]   ;;  %v392_v10 = vld [vmem:[%s1706_s3 + $0x8] sm:$0xff]  ;;  %vm372_vm1 = vcmask 1039360   ;;  %vm379_vm2 = vcmask 1031168   ;;  %vm386_vm3 = vcmask 1022976  }
  0x5c   : > { %368 = vrot.lane.b32.xlu0 %v1151_v2, %s1317_s26  ;;  %1023 = vmatpush3.bf16.msra.mxu0 %v1151_v2  ;;  %v1557_v8 = vld [vmem:[%s1519_s13 + $0x18] sm:$0xff]   ;;  %v391_v11 = vld [vmem:[%s1706_s3] sm:$0xff]  ;;  %v960_v12 = vld [vmem:[%s1706_s3 + $0x10] sm:$0xff]  ;;  %vm408_vm4 = vcmask 523264   ;;  %s947_s21 = sshll.u32 %s1515_s14, 6  ;;  %s1001_s7 = sshll.u32 %s1301_s18, 10 }
  0x5d   : > { %1024 = vmatprep.subr.bf16.mxu0 %v1316_v0  ;;  %1036 = vmatprep.subr.bf16.mxu1 %v1316_v0  ;;  %v961_v13 = vld [vmem:[%s1706_s3 + $0x18] sm:$0xff]  ;;  %v974_v14 = vld [vmem:[%s1706_s3 + $0x20] sm:$0xff]  ;;  %v975_v15 = vld [vmem:[%s1706_s3 + $0x28] sm:$0xff]  ;;  %s1637_s12 = scalar_lea.vmem [#allocation7], %s947_s21  ;;  %s1652_s5 = scalar_lea.hbm %s1707_s4, %s1001_s7 }
  0x5e   : > { %1030 = vmatprep.mubr.msk.bf16.mxu0 %vm1319_vm0, %v1316_v0  ;;  %1042 = vmatprep.mubr.msk.bf16.mxu1 %vm1319_vm0, %v1316_v0  ;;  %v988_v16 = vld [vmem:[%s1706_s3 + $0x30] sm:$0xff]  ;;  %v989_v17 = vld [vmem:[%s1706_s3 + $0x38] sm:$0xff]  ;;  %v1158_v33 = vld [vmem:[%s1705_s2] sm:$0xff]   ;;  %s782_s9 = sshll.u32 %s1637_s12, 4  ;;  %s765_s18 = scalar_lea.sflag [#allocation4], %s1515_s14  ;;  %s1646_s9 = int_to_ptr.vmem [resolvable:$true] %s782_s9 }
  0x5f   : > { %474 = vrot.lane.b32.xlu1 %v1152_v3, %s1317_s26  ;;  %1148 = vset.pattern.permute.xlu0 %v1321_v9  ;;  %v1159_v37 = vld [vmem:[%s1705_s2 + $0x8] sm:$0xff]   ;;  %v1160_v53 = vld [vmem:[%s1705_s2 + $0x10] sm:$0xff]   ;;  %v1161_v57 = vld [vmem:[%s1705_s2 + $0x18] sm:$0xff]   ;;  %p1723_p2 = scmp.ne.s32.totalorder %s1716_s28, 0 }
  0x60   : > { %370 = vrot.lane.b32.xlu0 %v1153_v4, %s1317_s26  ;;  %1149 = vset.pattern.permute.xlu1 %v1321_v9 }
  0x63   : > { %377 = vrot.lane.b32.xlu1 %v1153_v4, %s1318_s27 }
  0x64   : > { %375 = vrot.lane.b32.xlu0 %v1151_v2, %s1318_s27 }
  0x67   : > { %480 = vrot.lane.b32.xlu1 %v1152_v3, %s1318_s27 }
  0x68   : > { %478 = vrot.lane.b32.xlu0 %v1150_v1, %s1318_s27 }
  0x6b   : > { %384 = vrot.lane.b32.xlu1 %v1153_v4, %s1320_s25 }
  0x6c   : > { %382 = vrot.lane.b32.xlu0 %v1151_v2, %s1320_s25 }
  0x6f   : > { %486 = vrot.lane.b32.xlu1 %v1152_v3, %s1320_s25 }
  0x70   : > { %484 = vrot.lane.b32.xlu0 %v1150_v1, %s1320_s25 }
  0x73   : > { %577 = vrot.lane.b32.xlu1 %v1154_v5, %s1317_s26 }
  0x74   : > { %575 = vrot.lane.b32.xlu0 %v1550_v6, %s1317_s26 }
  0x77   : > { %680 = vrot.lane.b32.xlu1 %v1156_v7, %s1317_s26 }
  0x78   : > { %678 = vrot.lane.b32.xlu0 %v1557_v8, %s1317_s26  ;;  %s1223_s26 = scalar_lea.vmem %s1646_s9, 1024 }
  0x79   : > { %p1224_p0 = scmp.ne.s32.totalorder %s1646_s9, %s1223_s26 }
  0x7b   : > { %583 = vrot.lane.b32.xlu1 %v1154_v5, %s1318_s27  ;;  %p1225_p12 = pnand %p1224_p0, %p1723_p2 }
  0x7c   : > { %581 = vrot.lane.b32.xlu0 %v1550_v6, %s1318_s27 }
  0x7d   : > { %p1226_p13 = pneg %p1225_p12 }
  0x7f   : > { %686 = vrot.lane.b32.xlu1 %v1156_v7, %s1318_s27 }
  0x80   : > { %684 = vrot.lane.b32.xlu0 %v1557_v8, %s1318_s27  ;;  %s1322_s27 = smov [#allocation7]  }
  0x83   : > { %589 = vrot.lane.b32.xlu1 %v1154_v5, %s1320_s25 }
  0x84   : > { %587 = vrot.lane.b32.xlu0 %v1550_v6, %s1320_s25 }
  0x87   : > { %692 = vrot.lane.b32.xlu1 %v1156_v7, %s1320_s25 }
  0x88   : > { %690 = vrot.lane.b32.xlu0 %v1557_v8, %s1320_s25  ;;  %s1227_s25 = sshll.u32 %s1322_s27, 4  ;;  %s1228_s25 = int_to_ptr.vmem [resolvable:$false] %s1227_s25 }
  0x89   : > { %s1229_s8 = scalar_lea.vmem %s1228_s25, 2048  ;;  %p1230_p6 = scmp.lt.s32.totalorder %s1646_s9, %s1228_s25 }
  0x8a   : > { %p1231_p7 = scmp.lt.s32.totalorder %s1229_s8, %s1223_s26 }
  0x8b   : > { %400 = vperm.xlu1 %1149, %v392_v10  }
  0x8c   : > { %395 = vperm.xlu0 %1148, %v391_v11   ;;  %p1232_p9 = por %p1231_p7, %p1230_p6 }
  0x8e   : > { %p1233_p11 = pnand %p1232_p9, %p1226_p13 }
  0x8f   : > { %498 = vperm.xlu1 %1149, %v960_v12  }
  0x90   : > { %503 = vperm.xlu0 %1148, %v961_v13  }
  0x93   : > { %601 = vperm.xlu1 %1149, %v974_v14  }
  0x94   : > { %606 = vperm.xlu0 %1148, %v975_v15  }
  0x97   : > { %704 = vperm.xlu1 %1149, %v988_v16  }
  0x98   : > { %709 = vperm.xlu0 %1148, %v989_v17  }
  0xcd   : > { %v473_v18 = vpop.permute.xlu1 %472 }
  0xce   : > { %v369_v19 = vpop.permute.xlu0 %368 }
  0xd1   : > { %v475_v20 = vpop.permute.xlu1 %474 }
  0xd2   : > { %v371_v21 = vpop.permute.xlu0 %370  ;;  %v476_v22 = vsel %vm372_vm1, %v473_v18, %v475_v20 }
  0xd3   : > { %v373_v23 = vsel %vm372_vm1, %v369_v19, %v371_v21  ;;  %1037 = vmatpush3.bf16.msra.mxu1 %v476_v22 }
  0xd4   : > { %1025 = vmatpush3.bf16.msra.mxu0 %v373_v23  ;;  %1038 = vmatprep.subr.bf16.mxu1 %v1316_v0 }
  0xd5   : > { %v378_v24 = vpop.permute.xlu1 %377  ;;  %1026 = vmatprep.subr.bf16.mxu0 %v1316_v0 }
  0xd6   : > { %v376_v25 = vpop.permute.xlu0 %375 }
  0xd7   : > { %v380_v26 = vsel %vm379_vm2, %v376_v25, %v378_v24 }
  0xd8   : > { %1027 = vmatpush3.bf16.msra.mxu0 %v380_v26 }
  0xd9   : > { %v481_v27 = vpop.permute.xlu1 %480  ;;  %1028 = vmatprep.subr.bf16.mxu0 %v1316_v0 }
  0xda   : > { %v479_v28 = vpop.permute.xlu0 %478 }
  0xdb   : > { %v482_v29 = vsel %vm379_vm2, %v479_v28, %v481_v27 }
  0xdc   : > { %1039 = vmatpush3.bf16.msra.mxu1 %v482_v29 }
  0xdd   : > { %v385_v30 = vpop.permute.xlu1 %384  ;;  %1040 = vmatprep.subr.bf16.mxu1 %v1316_v0 }
  0xde   : > { %v383_v31 = vpop.permute.xlu0 %382 }
  0xdf   : > { %v387_v32 = vsel %vm386_vm3, %v383_v31, %v385_v30 }
  0xe0   : > { %1029 = vmatpush3.bf16.msra.mxu0 %v387_v32 }
  0xe1   : > { %v487_v34 = vpop.permute.xlu1 %486  ;;  %1046 = vmatprep.subr.bf16.mxu0 %v1316_v0 }
  0xe2   : > { %v485_v35 = vpop.permute.xlu0 %484 }
  0xe3   : > { %1031 = vmatmul.mubr.msk.bf16.vlgmr.msra.gmra.mrb[0].mxu0 %vm408_vm4, %v1158_v33  ;;  %v488_v36 = vsel %vm386_vm3, %v485_v35, %v487_v34 }
  0xe4   : > { %1041 = vmatpush3.bf16.msra.mxu1 %v488_v36  ;;  %1047 = vmatpush3.bf16.msra.mxu0 %v1550_v6 }
  0xe5   : > { %v578_v38 = vpop.permute.xlu1 %577  ;;  %1048 = vmatprep.subr.bf16.mxu0 %v1316_v0  ;;  %1058 = vmatprep.subr.bf16.mxu1 %v1316_v0 }
  0xe6   : > { %v576_v39 = vpop.permute.xlu0 %575  ;;  %1054 = vmatprep.mubr.msk.bf16.mxu0 %vm1319_vm0, %v1316_v0 }
  0xe7   : > { %v579_v40 = vsel %vm372_vm1, %v576_v39, %v578_v38  ;;  %1043 = vmatmul.mubr.msk.bf16.vlgmr.msra.gmra.mrb[0].mxu1 %vm408_vm4, %v1159_v37 }
  0xe8   : > { %1049 = vmatpush3.bf16.msra.mxu0 %v579_v40  ;;  %1059 = vmatpush3.bf16.msra.mxu1 %v1557_v8 }
  0xe9   : > { %v681_v41 = vpop.permute.xlu1 %680  ;;  %1060 = vmatprep.subr.bf16.mxu1 %v1316_v0  ;;  %1050 = vmatprep.subr.bf16.mxu0 %v1316_v0 }
  0xea   : > { %v679_v42 = vpop.permute.xlu0 %678  ;;  %1066 = vmatprep.mubr.msk.bf16.mxu1 %vm1319_vm0, %v1316_v0 }
  0xeb   : > { %v682_v43 = vsel %vm372_vm1, %v679_v42, %v681_v41 }
  0xec   : > { %1061 = vmatpush3.bf16.msra.mxu1 %v682_v43 }
  0xed   : > { %v584_v44 = vpop.permute.xlu1 %583  ;;  %1062 = vmatprep.subr.bf16.mxu1 %v1316_v0 }
  0xee   : > { %v582_v45 = vpop.permute.xlu0 %581 }
  0xef   : > { %v585_v46 = vsel %vm379_vm2, %v582_v45, %v584_v44 }
  0xf0   : > { %1051 = vmatpush3.bf16.msra.mxu0 %v585_v46 }
  0xf1   : > { %v687_v47 = vpop.permute.xlu1 %686  ;;  %1052 = vmatprep.subr.bf16.mxu0 %v1316_v0 }
  0xf2   : > { %v685_v48 = vpop.permute.xlu0 %684 }
  0xf3   : > { %v688_v49 = vsel %vm379_vm2, %v685_v48, %v687_v47 }
  0xf4   : > { %1063 = vmatpush3.bf16.msra.mxu1 %v688_v49 }
  0xf5   : > { %v590_v50 = vpop.permute.xlu1 %589  ;;  %1064 = vmatprep.subr.bf16.mxu1 %v1316_v0 }
  0xf6   : > { %v588_v51 = vpop.permute.xlu0 %587 }
  0xf7   : > { %v591_v52 = vsel %vm386_vm3, %v588_v51, %v590_v50 }
  0xf8   : > { %1053 = vmatpush3.bf16.msra.mxu0 %v591_v52 }
  0xf9   : > { %v693_v54 = vpop.permute.xlu1 %692 }
  0xfa   : > { %v691_v55 = vpop.permute.xlu0 %690 }
  0xfb   : > { %v694_v56 = vsel %vm386_vm3, %v691_v55, %v693_v54  ;;  %1055 = vmatmul.mubr.msk.bf16.vlgmr.msra.gmra.mrb[4].mxu0 %vm408_vm4, %v1160_v53 }
  0xfc   : > { %1065 = vmatpush3.bf16.msra.mxu1 %v694_v56 }
  0xff   : > { %1067 = vmatmul.mubr.msk.bf16.vlgmr.msra.gmra.mrb[4].mxu1 %vm408_vm4, %v1161_v57 }
 0x10a   : > { %v401_v58 = vpop.permute.xlu1 %400 }
 0x10b   : > { %v396_v59 = vpop.permute.xlu0 %395 }
 0x10e   : > { %v499_v2 = vpop.permute.xlu1 %498 }
 0x10f   : > { %v504_v6 = vpop.permute.xlu0 %503 }
 0x112   : > { %v602_v10 = vpop.permute.xlu1 %601 }
 0x113   : > { %v607_v11 = vpop.permute.xlu0 %606 }
 0x116   : > { %v705_v18 = vpop.permute.xlu1 %704 }
 0x117   : > { %v710_v22 = vpop.permute.xlu0 %709 }
 0x1b6   : > { %v446_v60 = vpop.f32.mrb[0].mxu0 }
 0x1b7   : > { %v447_v61 = vadd.f32 %v446_v60, %v396_v59  ;;  %v1032_v62 = vpop.f32.mrb[1].mxu0 }
 0x1b8   : > { %v449_v63 = vpop.f32.mrb[2].mxu0 }
 0x1b9   : > { %453 = vst [vmem:[%s1637_s12] sm:$0xff] %v447_v61  ;;  %v450_v0 = vadd.f32 %v449_v63, %v401_v58  ;;  %v1033_v1 = vpop.f32.mrb[3].mxu0 }
 0x1ba   : > { %v548_v3 = vpop.f32.mrb[0].mxu1 }
 0x1bb   : > { %v549_v4 = vadd.f32 %v548_v3, %v499_v2  ;;  %v1044_v5 = vpop.f32.mrb[1].mxu1  ;;  %454 = vst [vmem:[%s1637_s12 + $0x8] sm:$0xff] %v450_v0 }
 0x1bc   : > { %v551_v7 = vpop.f32.mrb[2].mxu1 }
 0x1bd   : > { %964 = vst [vmem:[%s1637_s12 + $0x10] sm:$0xff] %v549_v4  ;;  %v552_v8 = vadd.f32 %v551_v7, %v504_v6  ;;  %v1045_v9 = vpop.f32.mrb[3].mxu1 }
 0x1bf   : > { %965 = vst [vmem:[%s1637_s12 + $0x18] sm:$0xff] %v552_v8 }
 0x1ce   : > { %v651_v12 = vpop.f32.mrb[4].mxu0 }
 0x1cf   : > { %v652_v13 = vadd.f32 %v651_v12, %v602_v10  ;;  %v1056_v14 = vpop.f32.mrb[5].mxu0 }
 0x1d0   : > { %v654_v15 = vpop.f32.mrb[6].mxu0 }
 0x1d1   : > { %978 = vst [vmem:[%s1637_s12 + $0x20] sm:$0xff] %v652_v13  ;;  %v655_v16 = vadd.f32 %v654_v15, %v607_v11  ;;  %v1057_v17 = vpop.f32.mrb[7].mxu0 }
 0x1d2   : > { %v754_v19 = vpop.f32.mrb[4].mxu1 }
 0x1d3   : > { %979 = vst [vmem:[%s1637_s12 + $0x28] sm:$0xff] %v655_v16  ;;  %v755_v20 = vadd.f32 %v754_v19, %v705_v18  ;;  %v1068_v21 = vpop.f32.mrb[5].mxu1 }
 0x1d4   : > { %v757_v23 = vpop.f32.mrb[6].mxu1 }
 0x1d5   : > { %992 = vst [vmem:[%s1637_s12 + $0x30] sm:$0xff] %v755_v20  ;;  %v758_v24 = vadd.f32 %v757_v23, %v710_v22  ;;  %v1069_v25 = vpop.f32.mrb[7].mxu1 }
 0x1d7   : > { %993 = vst [vmem:[%s1637_s12 + $0x38] sm:$0xff] %v758_v24 }
 0x1d8   : > { %1236 = shalt.err (!%p1233_p11)
}
 0x1d9   : > { %s1237_s24 = scalar_lea.hbm %s1652_s5, 1024  ;;  %s1241_s0 = scalar_lea.hbm %s1707_s4, 2048 }
 0x1da   : > { %p1238_p5 = scmp.ne.s32.totalorder %s1652_s5, %s1237_s24  ;;  %p1242_p3 = scmp.lt.u32.totalorder %s1652_s5, %s1707_s4 }
 0x1db   : > { %p1243_p4 = scmp.lt.u32.totalorder %s1241_s0, %s1237_s24  ;;  %p1245_p0 = scmp.lt.u32.totalorder %s1237_s24, %s1652_s5 }
 0x1dc   : > { %p1239_p10 = pnand %p1238_p5, %p1723_p2 }
 0x1dd   : > { %p1244_p8 = por %p1243_p4, %p1242_p3 }
 0x1de   : > { %p1240_p1 = pneg %p1239_p10 }
 0x1df   : > { %p1246_p12 = por %p1245_p0, %p1244_p8 }
 0x1e1   : > { %p1247_p13 = pnand %p1246_p12, %p1240_p1 }
 0x1e3   : > { %1250 = shalt.err (!%p1247_p13)
}
 0x1e4   : > { %s1323_s21 = smov 128   ;;  %s1324_s12 = smov 8  }
 0x1e5   : > { %1074 = dma.vmem_to_hbm [thread:$0]  (%p1723_p2), %s1646_s9, 1024, %s1652_s5, %s765_s18, %s1323_s21, %s1323_s21, %s1324_s12  }
 0x1e6 PF: > { %s797_s7 = sand.u32 1, %s1289_s15   ;;  %p1724_p6 = scmp.ne.s32.totalorder %s1717_s30, 0 }
 0x1e7   : > { %p1725_p7 = scmp.ge.s32.totalorder %s1309_s20, 2  ;;  %s798_s13 = scalar_lea.sflag [#allocation4], %s797_s7 }
 0x1e9   : > { %p1084_p9 = pnand %p1725_p7, %p1724_p6 }
 0x1eb   : > { %1284 = dma.done.wait (!%p1084_p9), %s798_s13, 1024  }
 0x1ec   : > { %1286 = vsyncadd (!%p1084_p9), %s798_s13, 4294966272  ;;  %s23_s20 = sadd.s32 1, %s1309_s20   ;;  %s1726_s28 = sld [smem:[#allocation11_spill]] }
 0x1ed   : > { %p20_p11 = scmp.ge.s32.totalorder %s23_s20, 4   ;;  %s1727_s15 = smov %s1293_s16 }
 0x1ee   : > { %s1728_s16 = smov %s1297_s17  ;;  %s1729_s17 = smov %s1406_s29 }
 0x1ef   : > { %s1730_s18 = smov %s1305_s19  ;;  %22 = sbr.rel (!%p20_p11) target bundleno = 10 (0xa), region = 115 }
 0x1f2   : > { %s1731_s19 = smov %s1726_s28 }
 0x1f6   :  { %803 = vsyncpa [#allocation3], 1 }
 0x1f7   :  { %805 = vsyncpa [#allocation3 + $0x1], 1 }
 0x1f8   :  { %806 = vsyncpa [#allocation6], 1 }
 0x1f9   :  { %808 = vsyncpa [#allocation6 + $0x1], 1 }
 0x1fa   :  { %809 = vsyncpa [#allocation4], 1 }
 0x1fb   :  { %811 = vsyncpa [#allocation4 + $0x1], 1 }

</bundles_post_ra>
